<compile_context>
chip_gen: v5e
topology: v5e:2x2
jax: 0.10.0
libtpu: 0.0.40
codegen_flags: <defaults>
</compile_context>

<pallas_src>
import jax
import jax.numpy as jnp
from jax import lax
from jax.experimental import pallas as pl
from jax.experimental.pallas import tpu as pltpu

# ---------------- model / problem sizes (small, consistent with the module) ----------
V = 50            # args.embed_num   (vocab)
D = 32            # args.embed_dim
Co = 8            # args.kernel_num  == num_primary_unit (required by the capsule matmul)
Ks = (3, 4, 5)    # args.kernel_sizes ; only Ks[0] reaches the output
K = Ks[0]
NUM_UNIT = 2      # num_classes
UNIT_SIZE = 100   # output_unit_size
S_PAD = 128       # lane-padded unit size (zero columns 100..127)
IN_UNIT = 8       # num_primary_unit  (== Co)
NUM_ROUTING = 3

N = 2             # batch
W = 16            # sequence length
L = W - K + 1     # conv output length (14)
LP = W            # sublane-padded conv length (rows L..LP-1 per batch are zeroed)
NW = N * W        # 32 rows: 8-aligned


def cnn_text_caps_kernel(emb_ref, wf_ref, bf_ref, out_ref):
    # Single invocation; all operands resident in VMEM.

    emb = emb_ref[...]                                                # (N*W, D) = (32, 32)

    # ---- im2col via sublane rolls of the full aligned slab (no unaligned slices) ----
    # rolled_k[r] = emb[(r + k) % NW]; wrap/overlap rows are masked below.
    cols = [emb]
    for k in range(1, K):
        cols.append(pltpu.roll(emb, shift=NW - k, axis=0))            # (32, 32) each
    windows = jnp.concatenate(cols, axis=-1)                          # (32, K*D = 96)

    # ---- fused Conv2d + capsule projection: one (32,96)@(96,256) MXU matmul ----
    # (no ReLU between them in forward(), so the weight fusion is exact)
    uhat2d = jnp.dot(windows, wf_ref[...],
                     preferred_element_type=jnp.float32) + bf_ref[...]  # (32, U*S_PAD)

    # ---- reshape to (N, U, LP, S_PAD); lane slices are 128-aligned, sublane split
    #      32 -> (2, 16) is a whole-vreg regrouping.
    per_unit = [uhat2d[:, u * S_PAD:(u + 1) * S_PAD].reshape(N, LP, S_PAD)
                for u in range(NUM_UNIT)]
    uhat = jnp.stack(per_unit, axis=1)                                 # (N, U, LP, S_PAD)

    # zero the padded rows l >= L (they hold roll wrap-around garbage); zero rows
    # contribute exactly 0 to s and to the agreement, so routing stays exact.
    l_ids = lax.broadcasted_iota(jnp.int32, (1, 1, LP, 1), 2)
    uhat = jnp.where(l_ids < L, uhat, 0.0)

    # ---- dynamic routing (num_routing iterations), fully vectorized ----
    b = jnp.zeros((NUM_UNIT, LP, 1), jnp.float32)    # routing logits, shared over batch
    v = None
    for _ in range(NUM_ROUTING):                     # static unroll (3)
        # softmax over the num_unit axis (exact reciprocal: 32 scalars, nil cost)
        m = jnp.max(b, axis=0, keepdims=True)                         # (1, LP, 1)
        e = jnp.exp(b - m)                                            # (U, LP, 1)
        z = jnp.sum(e, axis=0, keepdims=True)                         # (1, LP, 1)
        c = e / z                                                     # (U, LP, 1)
        c4 = c[None, :, :, :]                                         # (1, U, LP, 1)

        # s_j = sum_l c[u,l] * u_hat[n,u,l,:]   (padded rows are zero)
        s = jnp.sum(c4 * uhat, axis=2, keepdims=True)                 # (N, U, 1, S_PAD)

        # squash along unit_size (no epsilon, for parity with the reference)
        mag_sq = jnp.sum(s * s, axis=3, keepdims=True)                # (N, U, 1, 1)
        scale = (mag_sq / (1.0 + mag_sq)) * lax.rsqrt(mag_sq)         # EUP rsqrt
        v = s * scale                                                 # (N, U, 1, S_PAD)

        # agreement <u_hat, v>, mean over batch
        agree = jnp.sum(uhat * v, axis=3, keepdims=True)              # (N, U, LP, 1)
        b = b + jnp.mean(agree, axis=0)                               # (U, LP, 1)

    # one dense lane-aligned output slab; lane padding sliced off in the wrapper
    out_ref[...] = v[:, :, 0, :]                                      # (N, U, S_PAD)


def prepare_fused_weights(conv_w, conv_b, caps_w):
    """One-time weight preprocessing (exact: conv -> capsule is linear, no nonlinearity).
    Hoisted out of the per-call path since weights are static."""
    hp = lax.Precision.HIGHEST
    conv_w2d = conv_w[:, 0, :, :].reshape(Co, K * D).T                      # (K*D, Co)
    caps_m = jnp.transpose(caps_w[0, 0], (2, 0, 1))                         # (Co, U, S)
    caps_m = jnp.pad(caps_m, ((0, 0), (0, 0), (0, S_PAD - UNIT_SIZE)))      # (Co, U, S_PAD)
    caps_m2d = caps_m.reshape(Co, NUM_UNIT * S_PAD)                         # (Co, U*S_PAD)
    w_fused = jnp.matmul(conv_w2d, caps_m2d, precision=hp)                  # (K*D, U*S_PAD)
    b_fused = jnp.matmul(conv_b[None, :], caps_m2d, precision=hp)           # (1,   U*S_PAD)
    return w_fused, b_fused


@jax.jit
def cnn_text_forward(idx, embed_table, w_fused, b_fused):
    """idx: (N, W) int32 token ids.  Returns (N, num_unit, unit_size, 1) like PyTorch."""
    # embedding lookup as a plain gather in the wrapper (32x32 f32 = 4 KB kernel input)
    emb2d = embed_table[idx.reshape(-1)]                                    # (N*W, D)

    out = pl.pallas_call(
        cnn_text_caps_kernel,
        out_shape=jax.ShapeDtypeStruct((N, NUM_UNIT, S_PAD), jnp.float32),
        in_specs=[pl.BlockSpec(memory_space=pltpu.MemorySpace.VMEM)] * 3,
        out_specs=pl.BlockSpec(memory_space=pltpu.MemorySpace.VMEM),
    )(emb2d, w_fused, b_fused)

    # drop lane padding, add trailing singleton dim (PyTorch layout); no transpose needed
    return out[:, :, :UNIT_SIZE, None]                                       # (N, U, S, 1)


def reference_forward(idx, embed_table, conv_w, conv_b, caps_w):
    """Pure-JAX reference mirroring the PyTorch forward semantics."""
    hp = lax.Precision.HIGHEST
    emb = embed_table[idx]                                                    # (N, W, D)
    windows = jnp.stack([emb[:, k:k + L, :] for k in range(K)], axis=2)      # (N, L, K, D)
    conv = jnp.einsum('nlkd,ckd->nlc', windows, conv_w[:, 0],
                      precision=hp) + conv_b                                  # (N, L, Co); no ReLU
    u_hat = jnp.einsum('usi,nli->nlus', caps_w[0, 0], conv, precision=hp)     # (N, L, U, S)
    b = jnp.zeros((L, NUM_UNIT), jnp.float32)
    v = None
    for _ in range(NUM_ROUTING):
        c = jax.nn.softmax(b, axis=1)                                         # (L, U)
        s = jnp.einsum('lu,nlus->nus', c, u_hat, precision=hp)                # (N, U, S)
        mag_sq = jnp.sum(s * s, axis=-1, keepdims=True)
        v = (mag_sq / (1.0 + mag_sq)) * (s / jnp.sqrt(mag_sq))                # squash
        agree = jnp.einsum('nlus,nus->nlu', u_hat, v, precision=hp)
        b = b + jnp.mean(agree, axis=0)
    return v[..., None]                                                       # (N, U, S, 1)


if __name__ == "__main__":
    key = jax.random.PRNGKey(0)
    k1, k2, k3, k4, k5 = jax.random.split(key, 5)

    # deterministic synthetic parameters (shapes follow the module __init__)
    idx = jax.random.randint(k1, (N, W), 0, V, dtype=jnp.int32)                    # input x
    embed_table = jax.random.normal(k2, (V, D), jnp.float32)                       # nn.Embedding(V, D)
    conv_w = jax.random.normal(k3, (Co, 1, K, D), jnp.float32) / jnp.sqrt(K * D)   # Conv2d(1, Co, (K, D))
    conv_b = 0.05 * jax.random.normal(k4, (Co,), jnp.float32)
    caps_w = 0.1 * jax.random.normal(k5, (1, 1, NUM_UNIT, UNIT_SIZE, IN_UNIT),
                                     jnp.float32)                                  # CapsuleLayer weight

    # one-time weight fusion, hoisted out of the per-call path
    w_fused, b_fused = prepare_fused_weights(conv_w, conv_b, caps_w)
    w_fused, b_fused = jax.block_until_ready((w_fused, b_fused))

    out = cnn_text_forward(idx, embed_table, w_fused, b_fused)
    out = jax.block_until_ready(out)
    assert out.shape == (N, NUM_UNIT, UNIT_SIZE, 1)

    ref = reference_forward(idx, embed_table, conv_w, conv_b, caps_w)
    max_err = float(jnp.max(jnp.abs(out - ref)))
    assert bool(jnp.all(jnp.isfinite(out))), "non-finite output"
    assert max_err < 5e-3, f"mismatch vs reference: {max_err}"

    print("KERNEL_OK")
</pallas_src>

<mosaic_0001>
module attributes {stable_mosaic.version = 11 : i64} {
  func.func @cnn_text_caps_kernel(%arg0: memref<32x32xf32, #tpu.memory_space<vmem>>, %arg1: memref<96x256xf32, #tpu.memory_space<vmem>>, %arg2: memref<1x256xf32, #tpu.memory_space<vmem>>, %arg3: memref<2x2x128xf32, #tpu.memory_space<vmem>>) attributes {dimension_semantics = [], scalar_prefetch = 0 : i64, scratch_operands = 0 : i64, tpu.core_type = #tpu.core_type<tc>} {
    %c0 = arith.constant 0 : index
    %c0_0 = arith.constant 0 : index
    %0 = vector.load %arg0[%c0, %c0_0] : memref<32x32xf32, #tpu.memory_space<vmem>>, vector<32x32xf32>
    %c31_i32 = arith.constant 31 : i32
    %1 = tpu.dynamic_rotate %0 by %c31_i32 dim 0 : vector<32x32xf32>, i32 -> vector<32x32xf32>
    %c30_i32 = arith.constant 30 : i32
    %2 = tpu.dynamic_rotate %0 by %c30_i32 dim 0 : vector<32x32xf32>, i32 -> vector<32x32xf32>
    %3 = tpu.concatenate %0, %1, %2 in 1 : vector<32x32xf32>, vector<32x32xf32>, vector<32x32xf32> -> vector<32x96xf32>
    %c0_1 = arith.constant 0 : index
    %c0_2 = arith.constant 0 : index
    %4 = vector.load %arg1[%c0_1, %c0_2] : memref<96x256xf32, #tpu.memory_space<vmem>>, vector<96x256xf32>
    %cst = arith.constant dense<0.000000e+00> : vector<32x256xf32>
    %5 = tpu.matmul %3, %4, %cst {dimension_numbers = #tpu.dot_dimension_numbers<[1], [0], [0], [1], [0, 0, 1, 1], [], []>} : vector<32x96xf32>, vector<96x256xf32>, vector<32x256xf32> -> vector<32x256xf32>
    %c0_3 = arith.constant 0 : index
    %c0_4 = arith.constant 0 : index
    %6 = vector.load %arg2[%c0_3, %c0_4] : memref<1x256xf32, #tpu.memory_space<vmem>>, vector<1x256xf32>
    %7 = vector.broadcast %6 : vector<1x256xf32> to vector<32x256xf32>
    %8 = arith.addf %5, %7 : vector<32x256xf32>
    %9 = vector.extract_strided_slice %8 {offsets = [0, 0], sizes = [32, 128], strides = [1, 1]} : vector<32x256xf32> to vector<32x128xf32>
    %10 = vector.shape_cast %9 : vector<32x128xf32> to vector<2x16x128xf32>
    %11 = vector.extract_strided_slice %8 {offsets = [0, 128], sizes = [32, 128], strides = [1, 1]} : vector<32x256xf32> to vector<32x128xf32>
    %12 = vector.shape_cast %11 : vector<32x128xf32> to vector<2x16x128xf32>
    %13 = vector.shape_cast %10 : vector<2x16x128xf32> to vector<2x1x16x128xf32>
    %14 = vector.shape_cast %12 : vector<2x16x128xf32> to vector<2x1x16x128xf32>
    %15 = tpu.concatenate %13, %14 in 1 : vector<2x1x16x128xf32>, vector<2x1x16x128xf32> -> vector<2x2x16x128xf32>
    %16 = tpu.iota {dimensions = array<i32: 2>} : vector<1x1x16x1xi32>
    %c14_i32 = arith.constant 14 : i32
    %17 = vector.broadcast %c14_i32 : i32 to vector<1x1x16x1xi32>
    %18 = arith.cmpi slt, %16, %17 : vector<1x1x16x1xi32>
    %cst_5 = arith.constant 0.000000e+00 : f32
    %19 = vector.shape_cast %18 : vector<1x1x16x1xi1> to vector<1x1x16x1xi1>
    %20 = vector.broadcast %19 : vector<1x1x16x1xi1> to vector<2x2x16x128xi1>
    %21 = vector.broadcast %cst_5 : f32 to vector<2x2x16x128xf32>
    %22 = arith.select %20, %15, %21 : vector<2x2x16x128xi1>, vector<2x2x16x128xf32>
    %cst_6 = arith.constant 0.000000e+00 : f32
    %23 = vector.broadcast %cst_6 : f32 to vector<2x16x1xf32>
    %cst_7 = arith.constant dense<0xFF800000> : vector<16x1xf32>
    %24 = vector.multi_reduction <maximumf>, %23, %cst_7 [0] : vector<2x16x1xf32> to vector<16x1xf32>
    %25 = vector.shape_cast %24 : vector<16x1xf32> to vector<1x16x1xf32>
    %26 = vector.broadcast %25 : vector<1x16x1xf32> to vector<2x16x1xf32>
    %27 = arith.subf %23, %26 : vector<2x16x1xf32>
    %28 = math.exp %27 : vector<2x16x1xf32>
    %cst_8 = arith.constant dense<0.000000e+00> : vector<16x1xf32>
    %29 = vector.multi_reduction <add>, %28, %cst_8 [0] : vector<2x16x1xf32> to vector<16x1xf32>
    %30 = vector.shape_cast %29 : vector<16x1xf32> to vector<1x16x1xf32>
    %31 = vector.broadcast %30 : vector<1x16x1xf32> to vector<2x16x1xf32>
    %32 = arith.divf %28, %31 : vector<2x16x1xf32>
    %33 = vector.shape_cast %32 : vector<2x16x1xf32> to vector<1x2x16x1xf32>
    %34 = vector.broadcast %33 : vector<1x2x16x1xf32> to vector<2x2x16x128xf32>
    %35 = arith.mulf %34, %22 : vector<2x2x16x128xf32>
    %cst_9 = arith.constant dense<0.000000e+00> : vector<2x2x128xf32>
    %36 = vector.multi_reduction <add>, %35, %cst_9 [2] : vector<2x2x16x128xf32> to vector<2x2x128xf32>
    %37 = vector.shape_cast %36 : vector<2x2x128xf32> to vector<2x2x1x128xf32>
    %38 = arith.mulf %37, %37 : vector<2x2x1x128xf32>
    %cst_10 = arith.constant dense<0.000000e+00> : vector<2x2x1xf32>
    %39 = vector.multi_reduction <add>, %38, %cst_10 [3] : vector<2x2x1x128xf32> to vector<2x2x1xf32>
    %40 = vector.shape_cast %39 : vector<2x2x1xf32> to vector<2x2x1x1xf32>
    %cst_11 = arith.constant 1.000000e+00 : f32
    %41 = vector.broadcast %cst_11 : f32 to vector<2x2x1x1xf32>
    %42 = arith.addf %41, %40 : vector<2x2x1x1xf32>
    %43 = arith.divf %40, %42 : vector<2x2x1x1xf32>
    %44 = math.rsqrt %40 : vector<2x2x1x1xf32>
    %45 = arith.mulf %43, %44 : vector<2x2x1x1xf32>
    %46 = vector.broadcast %45 : vector<2x2x1x1xf32> to vector<2x2x1x128xf32>
    %47 = arith.mulf %37, %46 : vector<2x2x1x128xf32>
    %48 = vector.broadcast %47 : vector<2x2x1x128xf32> to vector<2x2x16x128xf32>
    %49 = arith.mulf %22, %48 : vector<2x2x16x128xf32>
    %cst_12 = arith.constant dense<0.000000e+00> : vector<2x2x16xf32>
    %50 = vector.multi_reduction <add>, %49, %cst_12 [3] : vector<2x2x16x128xf32> to vector<2x2x16xf32>
    %51 = vector.shape_cast %50 : vector<2x2x16xf32> to vector<2x2x16x1xf32>
    %cst_13 = arith.constant dense<0.000000e+00> : vector<2x16x1xf32>
    %52 = vector.multi_reduction <add>, %51, %cst_13 [0] : vector<2x2x16x1xf32> to vector<2x16x1xf32>
    %cst_14 = arith.constant 2.000000e+00 : f32
    %53 = vector.broadcast %cst_14 : f32 to vector<2x16x1xf32>
    %54 = arith.divf %52, %53 : vector<2x16x1xf32>
    %55 = arith.addf %23, %54 : vector<2x16x1xf32>
    %cst_15 = arith.constant dense<0xFF800000> : vector<16x1xf32>
    %56 = vector.multi_reduction <maximumf>, %55, %cst_15 [0] : vector<2x16x1xf32> to vector<16x1xf32>
    %57 = vector.shape_cast %56 : vector<16x1xf32> to vector<1x16x1xf32>
    %58 = vector.broadcast %57 : vector<1x16x1xf32> to vector<2x16x1xf32>
    %59 = arith.subf %55, %58 : vector<2x16x1xf32>
    %60 = math.exp %59 : vector<2x16x1xf32>
    %cst_16 = arith.constant dense<0.000000e+00> : vector<16x1xf32>
    %61 = vector.multi_reduction <add>, %60, %cst_16 [0] : vector<2x16x1xf32> to vector<16x1xf32>
    %62 = vector.shape_cast %61 : vector<16x1xf32> to vector<1x16x1xf32>
    %63 = vector.broadcast %62 : vector<1x16x1xf32> to vector<2x16x1xf32>
    %64 = arith.divf %60, %63 : vector<2x16x1xf32>
    %65 = vector.shape_cast %64 : vector<2x16x1xf32> to vector<1x2x16x1xf32>
    %66 = vector.broadcast %65 : vector<1x2x16x1xf32> to vector<2x2x16x128xf32>
    %67 = arith.mulf %66, %22 : vector<2x2x16x128xf32>
    %cst_17 = arith.constant dense<0.000000e+00> : vector<2x2x128xf32>
    %68 = vector.multi_reduction <add>, %67, %cst_17 [2] : vector<2x2x16x128xf32> to vector<2x2x128xf32>
    %69 = vector.shape_cast %68 : vector<2x2x128xf32> to vector<2x2x1x128xf32>
    %70 = arith.mulf %69, %69 : vector<2x2x1x128xf32>
    %cst_18 = arith.constant dense<0.000000e+00> : vector<2x2x1xf32>
    %71 = vector.multi_reduction <add>, %70, %cst_18 [3] : vector<2x2x1x128xf32> to vector<2x2x1xf32>
    %72 = vector.shape_cast %71 : vector<2x2x1xf32> to vector<2x2x1x1xf32>
    %cst_19 = arith.constant 1.000000e+00 : f32
    %73 = vector.broadcast %cst_19 : f32 to vector<2x2x1x1xf32>
    %74 = arith.addf %73, %72 : vector<2x2x1x1xf32>
    %75 = arith.divf %72, %74 : vector<2x2x1x1xf32>
    %76 = math.rsqrt %72 : vector<2x2x1x1xf32>
    %77 = arith.mulf %75, %76 : vector<2x2x1x1xf32>
    %78 = vector.broadcast %77 : vector<2x2x1x1xf32> to vector<2x2x1x128xf32>
    %79 = arith.mulf %69, %78 : vector<2x2x1x128xf32>
    %80 = vector.broadcast %79 : vector<2x2x1x128xf32> to vector<2x2x16x128xf32>
    %81 = arith.mulf %22, %80 : vector<2x2x16x128xf32>
    %cst_20 = arith.constant dense<0.000000e+00> : vector<2x2x16xf32>
    %82 = vector.multi_reduction <add>, %81, %cst_20 [3] : vector<2x2x16x128xf32> to vector<2x2x16xf32>
    %83 = vector.shape_cast %82 : vector<2x2x16xf32> to vector<2x2x16x1xf32>
    %cst_21 = arith.constant dense<0.000000e+00> : vector<2x16x1xf32>
    %84 = vector.multi_reduction <add>, %83, %cst_21 [0] : vector<2x2x16x1xf32> to vector<2x16x1xf32>
    %cst_22 = arith.constant 2.000000e+00 : f32
    %85 = vector.broadcast %cst_22 : f32 to vector<2x16x1xf32>
    %86 = arith.divf %84, %85 : vector<2x16x1xf32>
    %87 = arith.addf %55, %86 : vector<2x16x1xf32>
    %cst_23 = arith.constant dense<0xFF800000> : vector<16x1xf32>
    %88 = vector.multi_reduction <maximumf>, %87, %cst_23 [0] : vector<2x16x1xf32> to vector<16x1xf32>
    %89 = vector.shape_cast %88 : vector<16x1xf32> to vector<1x16x1xf32>
    %90 = vector.broadcast %89 : vector<1x16x1xf32> to vector<2x16x1xf32>
    %91 = arith.subf %87, %90 : vector<2x16x1xf32>
    %92 = math.exp %91 : vector<2x16x1xf32>
    %cst_24 = arith.constant dense<0.000000e+00> : vector<16x1xf32>
    %93 = vector.multi_reduction <add>, %92, %cst_24 [0] : vector<2x16x1xf32> to vector<16x1xf32>
    %94 = vector.shape_cast %93 : vector<16x1xf32> to vector<1x16x1xf32>
    %95 = vector.broadcast %94 : vector<1x16x1xf32> to vector<2x16x1xf32>
    %96 = arith.divf %92, %95 : vector<2x16x1xf32>
    %97 = vector.shape_cast %96 : vector<2x16x1xf32> to vector<1x2x16x1xf32>
    %98 = vector.broadcast %97 : vector<1x2x16x1xf32> to vector<2x2x16x128xf32>
    %99 = arith.mulf %98, %22 : vector<2x2x16x128xf32>
    %cst_25 = arith.constant dense<0.000000e+00> : vector<2x2x128xf32>
    %100 = vector.multi_reduction <add>, %99, %cst_25 [2] : vector<2x2x16x128xf32> to vector<2x2x128xf32>
    %101 = vector.shape_cast %100 : vector<2x2x128xf32> to vector<2x2x1x128xf32>
    %102 = arith.mulf %101, %101 : vector<2x2x1x128xf32>
    %cst_26 = arith.constant dense<0.000000e+00> : vector<2x2x1xf32>
    %103 = vector.multi_reduction <add>, %102, %cst_26 [3] : vector<2x2x1x128xf32> to vector<2x2x1xf32>
    %104 = vector.shape_cast %103 : vector<2x2x1xf32> to vector<2x2x1x1xf32>
    %cst_27 = arith.constant 1.000000e+00 : f32
    %105 = vector.broadcast %cst_27 : f32 to vector<2x2x1x1xf32>
    %106 = arith.addf %105, %104 : vector<2x2x1x1xf32>
    %107 = arith.divf %104, %106 : vector<2x2x1x1xf32>
    %108 = math.rsqrt %104 : vector<2x2x1x1xf32>
    %109 = arith.mulf %107, %108 : vector<2x2x1x1xf32>
    %110 = vector.broadcast %109 : vector<2x2x1x1xf32> to vector<2x2x1x128xf32>
    %111 = arith.mulf %101, %110 : vector<2x2x1x128xf32>
    %112 = vector.shape_cast %111 : vector<2x2x1x128xf32> to vector<2x2x128xf32>
    %c0_28 = arith.constant 0 : index
    %c0_29 = arith.constant 0 : index
    %c0_30 = arith.constant 0 : index
    %113 = vector.load %arg3[%c0_28, %c0_29, %c0_30] : memref<2x2x128xf32, #tpu.memory_space<vmem>>, vector<2x2x128xf32>
    tpu.vector_store %arg3[%c0_28, %c0_29, %c0_30], %112 {strides = array<i32>} : memref<2x2x128xf32, #tpu.memory_space<vmem>>, vector<2x2x128xf32>,
    return
  }
}

</mosaic_0001>

<bundles_post_ra>
// kernel: cnn_text_forward.1
= control target key start
LH: loop header
LB: loop body
LE: loop exit
PB: predicated region body
PF: predicated region fallthrough
CT: control target
= control target key end

     0   :  { %v23_v2 = vlaneseq  ;;  %s1018_s29 = smov 32   ;;  %s1711_s0 = inlined_call_operand.vmem [shape: f32[32,32], index: 0, kind: input, shape index: {}]   ;;  %s1712_s1 = inlined_call_operand.vmem [shape: f32[96,256], index: 1, kind: input, shape index: {}]   ;;  %s1713_s2 = inlined_call_operand.vmem [shape: f32[1,256], index: 2, kind: input, shape index: {}]   ;;  %s1714_s3 = inlined_call_operand.hbm [shape: f32[2,2,128], index: 3, kind: output, shape index: {}]  }
   0x1   :  { %v1046_v0 = vld [vmem:[%s1711_s0 + $0x10] sm:$0xff]  ;;  %v1051_v1 = vld [vmem:[%s1711_s0 + $0x18] sm:$0xff]  ;;  %v1056_v3 = vld [vmem:[%s1711_s0] sm:$0xff] }
   0x2   :  { %v21_v4 = vrot.slane %v1046_v0, 1  ;;  %v22_v5 = vrot.slane %v1051_v1, 1  ;;  %v1063_v6 = vld [vmem:[%s1711_s0 + $0x8] sm:$0xff]  ;;  %v19_v7 = vrot.slane %v1056_v3, 1  ;;  %v103_v8 = vld [vmem:[%s1712_s1 + $0xb0] sm:$0xff]  ;;  %v1069_v9 = vshrl.u32 %v23_v2, 7 }
   0x3   :  { %v20_v10 = vrot.slane %v1063_v6, 1  ;;  %128 = vmatpush.msra.mxu0 %v103_v8  ;;  %889 = vmatpush.msra.mxu2 %v103_v8  ;;  %v104_v11 = vld [vmem:[%s1712_s1 + $0xb8] sm:$0xff]  ;;  %v101_v12 = vld [vmem:[%s1712_s1 + $0xa0] sm:$0xff]  ;;  %v102_v13 = vld [vmem:[%s1712_s1 + $0xa8] sm:$0xff]  ;;  %v32_v17 = vrot.slane %v1046_v0, 2  ;;  %v33_v20 = vrot.slane %v1051_v1, 2 }
   0x4   :  { %157 = vmatpush.msra.mxu1 %v104_v11  ;;  %901 = vmatpush.msra.mxu3 %v104_v11  ;;  %vm25_vm0 = vcmp.lt.s32.totalorder %v1069_v9, 7  ;;  %v99_v16 = vld [vmem:[%s1712_s1 + $0x90] sm:$0xff]  ;;  %v100_v19 = vld [vmem:[%s1712_s1 + $0x98] sm:$0xff]  ;;  %v30_v21 = vrot.slane %v1056_v3, 2  ;;  %v31_v22 = vrot.slane %v1063_v6, 2  ;;  %v97_v23 = vld [vmem:[%s1712_s1 + $0x80] sm:$0xff] }
   0x5   :  { %129 = vmatpush.msra.mxu0 %v101_v12  ;;  %890 = vmatpush.msra.mxu2 %v101_v12  ;;  %v26_v14 = vsel %vm25_vm0, %v21_v4, %v22_v5  ;;  %v28_v15 = vsel %vm25_vm0, %v19_v7, %v20_v10  ;;  %v29_v18 = vsel %vm25_vm0, %v22_v5, %v19_v7 }
   0x6   :  { %158 = vmatpush.msra.mxu1 %v102_v13  ;;  %47 = vrot.lane.b32.xlu0 %v26_v14, %s1018_s29 }
   0x7   :  { %43 = vrot.lane.b32.xlu1 %v28_v15, %s1018_s29  ;;  %49 = vrot.lane.b32.xlu2 %v29_v18, %s1018_s29 }
   0x8   :  { %902 = vmatpush.msra.mxu3 %v102_v13 }
   0x9   :  { %8 = vsyncpa [#allocation3], 0  ;;  %vm34_vm1 = vcmp.lt.s32.totalorder %v1069_v9, 6  ;;  %130 = vmatpush.msra.mxu0 %v99_v16  ;;  %891 = vmatpush.msra.mxu2 %v99_v16  ;;  %v98_v24 = vld [vmem:[%s1712_s1 + $0x88] sm:$0xff]  ;;  %v95_v25 = vld [vmem:[%s1712_s1 + $0x70] sm:$0xff]  ;;  %s1019_s17 = smov 64   ;;  %v27_v34 = vsel %vm25_vm0, %v20_v10, %v21_v4 }
   0xa   :  { %159 = vmatpush.msra.mxu1 %v100_v19  ;;  %903 = vmatpush.msra.mxu3 %v100_v19  ;;  %v96_v26 = vld [vmem:[%s1712_s1 + $0x78] sm:$0xff]  ;;  %v35_v27 = vsel %vm34_vm1, %v32_v17, %v33_v20  ;;  %v37_v28 = vsel %vm34_vm1, %v30_v21, %v31_v22  ;;  %v38_v29 = vsel %vm34_vm1, %v33_v20, %v30_v21  ;;  %v93_v30 = vld [vmem:[%s1712_s1 + $0x60] sm:$0xff]  ;;  %v94_v31 = vld [vmem:[%s1712_s1 + $0x68] sm:$0xff]  ;;  %vm71_vm2 = vcmask 261120   ;;  %s1021_s18 = smov [#allocation2]   ;;  %s1022_s20 = smov 2  }
   0xb   :  { %131 = vmatpush.msra.mxu0 %v97_v23  ;;  %892 = vmatpush.msra.mxu2 %v97_v23  ;;  %v91_v32 = vld [vmem:[%s1712_s1 + $0x50] sm:$0xff]  ;;  %v92_v33 = vld [vmem:[%s1712_s1 + $0x58] sm:$0xff]  ;;  %v36_v35 = vsel %vm34_vm1, %v31_v22, %v32_v17  ;;  %v89_v36 = vld [vmem:[%s1712_s1 + $0x40] sm:$0xff]  ;;  %vm76_vm3 = vcmask 523264   ;;  %vm111_vm4 = vcmask 785408   ;;  %v182_v2 = vadd.s32 8, %v1069_v9 }
   0xc   :  { %160 = vmatpush.msra.mxu1 %v98_v24  ;;  %904 = vmatpush.msra.mxu3 %v98_v24  ;;  %v90_v37 = vld [vmem:[%s1712_s1 + $0x48] sm:$0xff]  ;;  %v87_v38 = vld [vmem:[%s1712_s1 + $0x30] sm:$0xff]  ;;  %v88_v39 = vld [vmem:[%s1712_s1 + $0x38] sm:$0xff]  ;;  %s867_s19 = sshll.u32 %s1021_s18, 4  ;;  %s868_s19 = int_to_ptr.vmem [resolvable:$true] %s867_s19 }
   0xd   :  { %132 = vmatpush.msra.mxu0 %v95_v25  ;;  %893 = vmatpush.msra.mxu2 %v95_v25  ;;  %v85_v40 = vld [vmem:[%s1712_s1 + $0x20] sm:$0xff]  ;;  %v86_v41 = vld [vmem:[%s1712_s1 + $0x28] sm:$0xff]  ;;  %v83_v42 = vld [vmem:[%s1712_s1 + $0x10] sm:$0xff]  ;;  %vm184_vm5 = vcmp.lt.s32.totalorder %v182_v2, 14 }
   0xe   :  { %161 = vmatpush.msra.mxu1 %v96_v26  ;;  %905 = vmatpush.msra.mxu3 %v96_v26  ;;  %v84_v43 = vld [vmem:[%s1712_s1 + $0x18] sm:$0xff]  ;;  %v81_v44 = vld [vmem:[%s1712_s1] sm:$0xff]  ;;  %v82_v45 = vld [vmem:[%s1712_s1 + $0x8] sm:$0xff] }
   0xf   :  { %63 = vrot.lane.b32.xlu0 %v35_v27, %s1019_s17  ;;  %59 = vrot.lane.b32.xlu1 %v37_v28, %s1019_s17 }
  0x10   :  { %65 = vrot.lane.b32.xlu2 %v38_v29, %s1019_s17  ;;  %133 = vmatpush.msra.mxu0 %v93_v30 }
  0x11   :  { %894 = vmatpush.msra.mxu2 %v93_v30  ;;  %162 = vmatpush.msra.mxu1 %v94_v31 }
  0x12   :  { %906 = vmatpush.msra.mxu3 %v94_v31  ;;  %134 = vmatpush.msra.mxu0 %v91_v32 }
  0x13   :  { %895 = vmatpush.msra.mxu2 %v91_v32  ;;  %163 = vmatpush.msra.mxu1 %v92_v33 }
  0x14   :  { %907 = vmatpush.msra.mxu3 %v92_v33  ;;  %135 = vmatpush.msra.mxu0 %v89_v36 }
  0x15   :  { %896 = vmatpush.msra.mxu2 %v89_v36  ;;  %164 = vmatpush.msra.mxu1 %v90_v37 }
  0x16   :  { %908 = vmatpush.msra.mxu3 %v90_v37  ;;  %136 = vmatpush.msra.mxu0 %v87_v38 }
  0x17   :  { %45 = vrot.lane.b32.xlu0 %v27_v34, %s1018_s29  ;;  %61 = vrot.lane.b32.xlu1 %v36_v35, %s1019_s17  ;;  %s869_s17 = sshll.u32 %s1714_s3, 4  ;;  %s870_s17 = int_to_ptr.hbm [resolvable:$true] %s869_s17 }
  0x18   :  { %897 = vmatpush.msra.mxu2 %v87_v38  ;;  %165 = vmatpush.msra.mxu1 %v88_v39 }
  0x19   :  { %909 = vmatpush.msra.mxu3 %v88_v39  ;;  %137 = vmatpush.msra.mxu0 %v85_v40 }
  0x1a   :  { %898 = vmatpush.msra.mxu2 %v85_v40  ;;  %166 = vmatpush.msra.mxu1 %v86_v41 }
  0x1b   :  { %910 = vmatpush.msra.mxu3 %v86_v41  ;;  %138 = vmatpush.msra.mxu0 %v83_v42 }
  0x1c   :  { %899 = vmatpush.msra.mxu2 %v83_v42  ;;  %167 = vmatpush.msra.mxu1 %v84_v43 }
  0x1d   :  { %911 = vmatpush.msra.mxu3 %v84_v43  ;;  %139 = vmatpush.msra.mxu0 %v81_v44 }
  0x1e   :  { %900 = vmatpush.msra.mxu2 %v81_v44  ;;  %168 = vmatpush.msra.mxu1 %v82_v45 }
  0x1f   :  { %912 = vmatpush.msra.mxu3 %v82_v45 }
  0x61   :  { %v50_v48 = vpop.permute.xlu2 %49 }
  0x62   :  { %v75_v55 = vsel %vm71_vm2, %v1051_v1, %v50_v48 }
  0x6a   :  { %v66_v56 = vpop.permute.xlu2 %65 }
  0x6b   :  { %v80_v60 = vsel %vm76_vm3, %v75_v55, %v66_v56 }
  0x78   :  { %v48_v46 = vpop.permute.xlu0 %47 }
  0x79   :  { %v44_v47 = vpop.permute.xlu1 %43  ;;  %v74_v49 = vsel %vm71_vm2, %v1046_v0, %v48_v46  ;;  %v105_v0 = vld [vmem:[%s1713_s2] sm:$0x3] }
  0x7a   :  { %v72_v50 = vsel %vm71_vm2, %v1056_v3, %v44_v47  ;;  %v107_v1 = vperm.slane %v105_v0, 0  ;;  %v108_v3 = vperm.slane %v105_v0, 1 }
  0x81   :  { %v64_v51 = vpop.permute.xlu0 %63  ;;  %v60_v52 = vpop.permute.xlu1 %59 }
  0x82   :  { %v77_v53 = vsel %vm76_vm3, %v72_v50, %v60_v52  ;;  %v79_v54 = vsel %vm76_vm3, %v74_v49, %v64_v51 }
  0x83   :  { %881 = vmatmul.msk.f32.vlgmr.msra.gmra.mxu0 %vm111_vm4, %v77_v53  ;;  %883 = vmatmul.msk.f32.vlgmr.msra.gmra.mxu2 %vm111_vm4, %v79_v54 }
  0x84   :  { %885 = vmatmul.msk.f32.vlgmr.msra.gmra.mxu1 %vm111_vm4, %v77_v53  ;;  %887 = vmatmul.msk.f32.vlgmr.msra.gmra.mxu3 %vm111_vm4, %v79_v54 }
  0x89   :  { %v46_v57 = vpop.permute.xlu0 %45  ;;  %v62_v58 = vpop.permute.xlu1 %61 }
  0x8a   :  { %v73_v59 = vsel %vm71_vm2, %v1063_v6, %v46_v57 }
  0x8b   :  { %884 = vmatmul.msk.f32.gmra.mxu2 %vm111_vm4, %v80_v60  ;;  %v78_v61 = vsel %vm76_vm3, %v73_v59, %v62_v58 }
  0x8c   :  { %888 = vmatmul.msk.f32.gmra.mxu3 %vm111_vm4, %v80_v60  ;;  %882 = vmatmul.msk.f32.gmra.mxu0 %vm111_vm4, %v78_v61 }
  0x8d   :  { %886 = vmatmul.msk.f32.gmra.mxu1 %vm111_vm4, %v78_v61 }
 0x100   :  { %v141_v62 = vpop.f32.mrf.mxu0 }
 0x101   :  { %v170_v63 = vpop.f32.mrf.mxu1  ;;  %v1199_v6 = vadd.f32 %v141_v62, %v107_v1 }
 0x102   :  { %v1201_v8 = vadd.f32 %v170_v63, %v108_v3 }
 0x103   :  { %v197_v9 = vmul.f32 0.5, %v1199_v6 }
 0x104   :  { %v199_v19 = vmul.f32 0.5, %v1201_v8 }
 0x106   :  { %v147_v4 = vpop.f32.mrf.mxu2 }
 0x107   :  { %v176_v5 = vpop.f32.mrf.mxu3  ;;  %v1211_v16 = vadd.f32 %v147_v4, %v107_v1 }
 0x108   :  { %v1215_v20 = vadd.f32 %v176_v5, %v108_v3 }
 0x109   :  { %v144_v7 = vpop.f32.mrf.mxu0  ;;  %v201_v31 = vmul.f32 0.5, %v1211_v16 }
 0x10a   :  { %v145_v10 = vadd.f32 %v144_v7, %v107_v1  ;;  %v173_v11 = vpop.f32.mrf.mxu1  ;;  %v203_v34 = vmul.f32 0.5, %v1215_v20 }
 0x10b   :  { %v174_v12 = vadd.f32 %v173_v11, %v108_v3 }
 0x10c   :  { %v1204_v13 = vsel %vm184_vm5, %v145_v10, 0.0 }
 0x10d   :  { %v198_v14 = vmul.f32 0.5, %v1204_v13  ;;  %v1208_v15 = vsel %vm184_vm5, %v174_v12, 0.0 }
 0x10e   :  { %v200_v17 = vmul.f32 0.5, %v1208_v15  ;;  %v150_v18 = vpop.f32.mrf.mxu2 }
 0x10f   :  { %v151_v21 = vadd.f32 %v150_v18, %v107_v1  ;;  %v179_v22 = vpop.f32.mrf.mxu3  ;;  %v205_v23 = vadd.f32 %v198_v14, %v197_v9 }
 0x110   :  { %v180_v24 = vadd.f32 %v179_v22, %v108_v3  ;;  %v212_v25 = vadd.f32 %v200_v17, %v199_v19 }
 0x111   :  { %v1218_v26 = vsel %vm184_vm5, %v151_v21, 0.0  ;;  %v206_v27 = vrot.slane %v205_v23, 4 }
 0x112   :  { %v202_v28 = vmul.f32 0.5, %v1218_v26  ;;  %v1222_v29 = vsel %vm184_vm5, %v180_v24, 0.0  ;;  %v213_v30 = vrot.slane %v212_v25, 4 }
 0x113   :  { %v204_v32 = vmul.f32 0.5, %v1222_v29  ;;  %v207_v33 = vadd.f32 %v206_v27, %v205_v23 }
 0x114   :  { %v214_v35 = vadd.f32 %v213_v30, %v212_v25  ;;  %v219_v36 = vadd.f32 %v202_v28, %v201_v31 }
 0x115   :  { %v208_v37 = vrot.slane %v207_v33, 2  ;;  %v226_v38 = vadd.f32 %v204_v32, %v203_v34 }
 0x116   :  { %v215_v39 = vrot.slane %v214_v35, 2  ;;  %v220_v40 = vrot.slane %v219_v36, 4 }
 0x117   :  { %v209_v41 = vadd.f32 %v208_v37, %v207_v33  ;;  %v227_v42 = vrot.slane %v226_v38, 4 }
 0x118   :  { %v216_v43 = vadd.f32 %v215_v39, %v214_v35  ;;  %v221_v44 = vadd.f32 %v220_v40, %v219_v36 }
 0x119   :  { %v210_v45 = vrot.slane %v209_v41, 1  ;;  %v228_v46 = vadd.f32 %v227_v42, %v226_v38 }
 0x11a   :  { %v217_v47 = vrot.slane %v216_v43, 1  ;;  %v222_v48 = vrot.slane %v221_v44, 2 }
 0x11b   :  { %v1227_v49 = vadd.f32 %v210_v45, %v209_v41  ;;  %v229_v50 = vrot.slane %v228_v46, 2 }
 0x11c   :  { %v1229_v51 = vadd.f32 %v217_v47, %v216_v43  ;;  %v223_v52 = vadd.f32 %v222_v48, %v221_v44 }
 0x11d   :  { %v233_v53 = vmul.f32 %v1227_v49, %v1227_v49  ;;  %v230_v54 = vadd.f32 %v229_v50, %v228_v46 }
 0x11e   :  { %v234_v55 = vmul.f32 %v1229_v51, %v1229_v51  ;;  %v224_v56 = vrot.slane %v223_v52, 1 }
 0x11f   :  { %237 = vadd.xlane.f32.xlu2 %v233_v53  ;;  %v231_v57 = vrot.slane %v230_v54, 1 }
 0x120   :  { %239 = vadd.xlane.f32.xlu0 %v234_v55  ;;  %v1235_v58 = vadd.f32 %v224_v56, %v223_v52 }
 0x121   :  { %v1237_v59 = vadd.f32 %v231_v57, %v230_v54 }
 0x122   :  { %v235_v60 = vmul.f32 %v1235_v58, %v1235_v58 }
 0x123   :  { %v236_v61 = vmul.f32 %v1237_v59, %v1237_v59 }
 0x124   :  { %241 = vadd.xlane.f32.xlu1 %v235_v60 }
 0x127   :  { %243 = vadd.xlane.f32.xlu2 %v236_v61 }
 0x192   :  { %v1243_v62 = vpop.xlane.xlu2 %237 }
 0x193   :  { %v1245_v63 = vpop.xlane.xlu0 %239  ;;  %v1248_v0 = vadd.f32 1.0, %v1243_v62  ;;  %918 = vrsqrt.f32 %v1243_v62  ;;  %vm315_vm9 = vweird.f32 %v1243_v62 }
 0x194   :  { %v1252_v1 = vadd.f32 1.0, %v1245_v63  ;;  %920 = vrsqrt.f32 %v1245_v63  ;;  %vm325_vm12 = vweird.f32 %v1245_v63 }
 0x195   :  { %922 = vrcp.f32 %v1248_v0  ;;  %v258_v3 = vand.u32 2147483647, %v1248_v0  ;;  %v260_v7 = vand.u32 2147483648, %v1248_v0  ;;  %vm254_vm6 = vweird.f32 %v1248_v0 }
 0x196   :  { %924 = vrcp.f32 %v1252_v1  ;;  %v275_v5 = vand.u32 2147483648, %v1252_v1  ;;  %v273_v11 = vand.u32 2147483647, %v1252_v1  ;;  %vm269_vm7 = vweird.f32 %v1252_v1 }
 0x197   :  { %v1257_v2 = vpop.xlane.xlu1 %241  ;;  %vm1286_vm8 = vcmp.eq.f32.partialorder %v258_v3, 8.507059e+37  ;;  %v261_v27 = vor.u32 1.1754944e-38, %v260_v7 }
 0x198   :  { %v1261_v4 = vadd.f32 1.0, %v1257_v2  ;;  %926 = vrsqrt.f32 %v1257_v2  ;;  %v276_v23 = vor.u32 1.1754944e-38, %v275_v5  ;;  %vm1294_vm10 = vcmp.eq.f32.partialorder %v273_v11, 8.507059e+37 }
 0x199   :  { %v1266_v10 = vpop.eup %918  ;;  %vm335_vm1 = vweird.f32 %v1257_v2 }
 0x19a   :  { %v1269_v12 = vpop.eup %920  ;;  %v310_v14 = vmul.f32 %v1266_v10, %v1243_v62  ;;  %928 = vrcp.f32 %v1261_v4  ;;  %v1274_v9 = vpop.xlane.xlu2 %243  ;;  %vm316_vm11 = vweird.f32 %v1266_v10  ;;  %v288_v35 = vand.u32 2147483647, %v1261_v4 }
 0x19b   :  { %v923_v17 = vpop.eup %922  ;;  %v320_v18 = vmul.f32 %v1269_v12, %v1245_v63  ;;  %v1280_v19 = vadd.f32 1.0, %v1274_v9  ;;  %930 = vrsqrt.f32 %v1274_v9  ;;  %vm326_vm13 = vweird.f32 %v1269_v12 }
 0x19c   :  { %v925_v21 = vpop.eup %924  ;;  %v311_v22 = vmul.f32 %v1266_v10, %v310_v14  ;;  %v250_v24 = vmul.f32 %v923_v17, %v1248_v0  ;;  %vm255_vm14 = vweird.f32 %v923_v17  ;;  %vm284_vm0 = vweird.f32 %v1261_v4 }
 0x19d   :  { %v321_v28 = vmul.f32 %v1269_v12, %v320_v18  ;;  %932 = vrcp.f32 %v1280_v19  ;;  %v265_v30 = vmul.f32 %v925_v21, %v1252_v1  ;;  %vm270_vm15 = vweird.f32 %v925_v21  ;;  %vm256_vm4 = vmor %vm254_vm6, %vm255_vm14 }
 0x19e   :  { %v1299_v32 = vpop.eup %926  ;;  %v312_v33 = vmul.f32 0.5, %v311_v22  ;;  %v251_v34 = vsub.f32 1.0, %v250_v24  ;;  %v290_v42 = vand.u32 2147483648, %v1261_v4  ;;  %vm1315_vm2 = vcmp.eq.f32.partialorder %v288_v35, 8.507059e+37  ;;  %vm271_vm5 = vmor %vm269_vm7, %vm270_vm15 }
 0x19f   :  { %v322_v36 = vmul.f32 0.5, %v321_v28  ;;  %v330_v37 = vmul.f32 %v1299_v32, %v1257_v2  ;;  %v266_v38 = vsub.f32 1.0, %v265_v30  ;;  %vm336_vm3 = vweird.f32 %v1299_v32  ;;  %vm317_vm6 = vmor %vm315_vm9, %vm316_vm11 }
 0x1a0   :  { %v929_v39 = vpop.eup %928  ;;  %v313_v40 = vsub.f32 1.5, %v312_v33  ;;  %v252_v41 = vmul.f32 %v923_v17, %v251_v34  ;;  %v291_v14 = vor.u32 1.1754944e-38, %v290_v42  ;;  %v303_v33 = vand.u32 2147483647, %v1280_v19 }
 0x1a1   :  { %v1308_v43 = vpop.eup %930  ;;  %v323_v44 = vsub.f32 1.5, %v322_v36  ;;  %v331_v45 = vmul.f32 %v1299_v32, %v330_v37  ;;  %v267_v46 = vmul.f32 %v925_v21, %v266_v38  ;;  %v280_v47 = vmul.f32 %v929_v39, %v1261_v4 }
 0x1a2   :  { %v340_v48 = vmul.f32 %v1308_v43, %v1274_v9  ;;  %v253_v50 = vadd.f32 %v923_v17, %v252_v41  ;;  %v314_v56 = vmul.f32 %v1266_v10, %v313_v40  ;;  %vm285_vm7 = vweird.f32 %v929_v39 }
 0x1a3   :  { %v933_v53 = vpop.eup %932  ;;  %v332_v54 = vmul.f32 0.5, %v331_v45  ;;  %v268_v55 = vadd.f32 %v925_v21, %v267_v46  ;;  %v281_v57 = vsub.f32 1.0, %v280_v47  ;;  %v324_v61 = vmul.f32 %v1269_v12, %v323_v44  ;;  %vm286_vm9 = vmor %vm284_vm0, %vm285_vm7 }
 0x1a4   :  { %v341_v60 = vmul.f32 %v1308_v43, %v340_v48  ;;  %v257_v3 = vsel %vm256_vm4, %v923_v17, %v253_v50  ;;  %v295_v5 = vmul.f32 %v933_v53, %v1280_v19  ;;  %vm299_vm11 = vweird.f32 %v1280_v19 }
 0x1a5   :  { %v333_v7 = vsub.f32 1.5, %v332_v54  ;;  %v272_v11 = vsel %vm271_vm5, %v925_v21, %v268_v55  ;;  %v262_v0 = vsel %vm1286_vm8, %v261_v27, %v257_v3  ;;  %v282_v1 = vmul.f32 %v929_v39, %v281_v57  ;;  %vm327_vm8 = vmor %vm325_vm12, %vm326_vm13 }
 0x1a6   :  { %v277_v18 = vsel %vm1294_vm10, %v276_v23, %v272_v11  ;;  %v263_v22 = vmul.f32 %v262_v0, %v1243_v62  ;;  %v342_v17 = vmul.f32 0.5, %v341_v60  ;;  %v318_v21 = vsel %vm317_vm6, %v1266_v10, %v314_v56  ;;  %vm337_vm12 = vmor %vm335_vm1, %vm336_vm3 }
 0x1a7   :  { %v278_v24 = vmul.f32 %v277_v18, %v1245_v63  ;;  %v296_v23 = vsub.f32 1.0, %v295_v5  ;;  %v328_v25 = vsel %vm327_vm8, %v1269_v12, %v324_v61  ;;  %v283_v28 = vadd.f32 %v929_v39, %v282_v1 }
 0x1a8   :  { %v349_v27 = vmul.f32 %v318_v21, %v263_v22  ;;  %v334_v62 = vmul.f32 %v1299_v32, %v333_v7  ;;  %vm300_vm10 = vweird.f32 %v933_v53  ;;  %v305_v10 = vand.u32 2147483648, %v1280_v19 }
 0x1a9   :  { %v350_v30 = vmul.f32 %v328_v25, %v278_v24  ;;  %v297_v31 = vmul.f32 %v933_v53, %v296_v23  ;;  %v287_v34 = vsel %vm286_vm9, %v929_v39, %v283_v28  ;;  %v343_v12 = vsub.f32 1.5, %v342_v17  ;;  %vm301_vm13 = vmor %vm299_vm11, %vm300_vm10 }
 0x1aa   :  { %v353_v63 = vmul.f32 %v349_v27, %v1227_v49  ;;  %v292_v36 = vsel %vm1315_vm2, %v291_v14, %v287_v34  ;;  %v306_v19 = vor.u32 1.1754944e-38, %v305_v10  ;;  %vm304_vm14 = vcmp.eq.f32.partialorder %v303_v33, 8.507059e+37 }
 0x1ab   :  { %v354_v35 = vmul.f32 %v350_v30, %v1229_v51  ;;  %v298_v4 = vadd.f32 %v933_v53, %v297_v31  ;;  %v293_v38 = vmul.f32 %v292_v36, %v1257_v2  ;;  %v338_v51 = vsel %vm337_vm12, %v1299_v32, %v334_v62 }
 0x1ac   :  { %v358_v37 = vmul.f32 %v353_v63, %v1204_v13  ;;  %v357_v49 = vmul.f32 %v353_v63, %v1199_v6  ;;  %v344_v44 = vmul.f32 %v1308_v43, %v343_v12  ;;  %vm346_vm15 = vweird.f32 %v1308_v43 }
 0x1ad   :  { %v359_v39 = vmul.f32 %v354_v35, %v1201_v8  ;;  %v302_v40 = vsel %vm301_vm13, %v933_v53, %v298_v4  ;;  %v351_v41 = vmul.f32 %v338_v51, %v293_v38  ;;  %vm345_vm0 = vweird.f32 %v1274_v9 }
 0x1ae   :  { %367 = vadd.xlane.f32.xlu0 %v358_v37  ;;  %365 = vadd.xlane.f32.xlu2 %v357_v49  ;;  %v307_v42 = vsel %vm304_vm14, %v306_v19, %v302_v40  ;;  %vm347_vm1 = vmor %vm345_vm0, %vm346_vm15  ;;  %v360_v46 = vmul.f32 %v354_v35, %v1208_v15 }
 0x1af   :  { %369 = vadd.xlane.f32.xlu1 %v359_v39  ;;  %v355_v45 = vmul.f32 %v351_v41, %v1235_v58  ;;  %v308_v2 = vmul.f32 %v307_v42, %v1274_v9  ;;  %v348_v32 = vsel %vm347_vm1, %v1308_v43, %v344_v44  ;;  %v1020_v9 = vmov 2.0  }
 0x1b0   :  { %934 = vrcp.f32 %v1020_v9 }
 0x1b1   :  { %v361_v47 = vmul.f32 %v355_v45, %v1211_v16  ;;  %v352_v48 = vmul.f32 %v348_v32, %v308_v2  ;;  %v362_v50 = vmul.f32 %v355_v45, %v1218_v26 }
 0x1b3   :  { %v356_v52 = vmul.f32 %v352_v48, %v1237_v59 }
 0x1b5   :  { %v363_v58 = vmul.f32 %v356_v52, %v1215_v20  ;;  %v364_v53 = vmul.f32 %v356_v52, %v1222_v29 }
 0x1b6   :  { %371 = vadd.xlane.f32.xlu2 %v360_v46  ;;  %373 = vadd.xlane.f32.xlu0 %v361_v47  ;;  %v935_v43 = vpop.eup %934 }
 0x1b7   :  { %375 = vadd.xlane.f32.xlu1 %v362_v50  ;;  %v386_v56 = vmul.f32 2.0, %v935_v43  ;;  %vm390_vm2 = vweird.f32 %v935_v43 }
 0x1b9   :  { %v387_v60 = vsub.f32 1.0, %v386_v56 }
 0x1bb   :  { %v388_v3 = vmul.f32 %v935_v43, %v387_v60 }
 0x1bd   :  { %v389_v7 = vadd.f32 %v935_v43, %v388_v3 }
 0x1be   :  { %377 = vadd.xlane.f32.xlu2 %v363_v58  ;;  %379 = vadd.xlane.f32.xlu0 %v364_v53 }
 0x1bf   :  { %v1377_v14 = vsel %vm390_vm2, %v935_v43, %v389_v7 }
 0x221   :  { %v368_v54 = vpop.xlane.xlu0 %367  ;;  %v366_v55 = vpop.xlane.xlu2 %365 }
 0x222   :  { %v370_v57 = vpop.xlane.xlu1 %369 }
 0x229   :  { %v372_v61 = vpop.xlane.xlu2 %371  ;;  %v374_v5 = vpop.xlane.xlu0 %373 }
 0x22a   :  { %v376_v11 = vpop.xlane.xlu1 %375  ;;  %v381_v59 = vadd.f32 %v374_v5, %v366_v55 }
 0x22b   :  { %v382_v0 = vadd.f32 %v376_v11, %v368_v54 }
 0x22c   :  { %v1380_v24 = vmul.f32 %v1377_v14, %v381_v59 }
 0x22d   :  { %v1383_v21 = vmul.f32 %v1377_v14, %v382_v0 }
 0x231   :  { %v378_v18 = vpop.xlane.xlu2 %377  ;;  %v380_v22 = vpop.xlane.xlu0 %379 }
 0x232   :  { %v383_v1 = vadd.f32 %v378_v18, %v370_v57  ;;  %v384_v17 = vadd.f32 %v380_v22, %v372_v61 }
 0x234   :  { %v1386_v23 = vmul.f32 %v1377_v14, %v383_v1  ;;  %v1389_v25 = vmul.f32 %v1377_v14, %v384_v17 }
 0x236   :  { %v400_v27 = vmax.f32 %v1380_v24, %v1386_v23  ;;  %v401_v28 = vmax.f32 %v1383_v21, %v1389_v25 }
 0x238   :  { %v402_v62 = vsub.f32 %v1380_v24, %v400_v27  ;;  %v404_v30 = vsub.f32 %v1386_v23, %v400_v27  ;;  %v403_v31 = vsub.f32 %v1383_v21, %v401_v28  ;;  %v405_v33 = vsub.f32 %v1389_v25, %v401_v28 }
 0x23a   :  { %v406_v63 = vmul.f32 1.442695, %v402_v62  ;;  %v410_v34 = vmul.f32 1.442695, %v404_v30  ;;  %v408_v10 = vmul.f32 1.442695, %v403_v31 }
 0x23b   :  { %v412_v12 = vmul.f32 1.442695, %v405_v33 }
 0x23c   :  { %936 = vpow2.f32 %v406_v63 }
 0x23d   :  { %938 = vpow2.f32 %v410_v34 }
 0x23e   :  { %940 = vpow2.f32 %v408_v10 }
 0x23f   :  { %942 = vpow2.f32 %v412_v12 }
 0x242   :  { %v937_v35 = vpop.eup %936 }
 0x243   :  { %v939_v36 = vpop.eup %938 }
 0x244   :  { %v941_v4 = vpop.eup %940  ;;  %v414_v37 = vadd.f32 %v939_v36, %v937_v35 }
 0x245   :  { %v943_v49 = vpop.eup %942 }
 0x246   :  { %944 = vrcp.f32 %v414_v37  ;;  %v415_v38 = vadd.f32 %v943_v49, %v941_v4  ;;  %v427_v42 = vand.u32 2147483648, %v414_v37  ;;  %v425_v45 = vand.u32 2147483647, %v414_v37 }
 0x247   :  { %vm421_vm4 = vweird.f32 %v414_v37 }
 0x248   :  { %946 = vrcp.f32 %v415_v38  ;;  %v442_v32 = vand.u32 2147483648, %v415_v38  ;;  %v440_v48 = vand.u32 2147483647, %v415_v38  ;;  %v428_v50 = vor.u32 1.1754944e-38, %v427_v42 }
 0x249   :  { %vm426_vm7 = vcmp.eq.f32.partialorder %v425_v45, 8.507059e+37  ;;  %vm436_vm8 = vweird.f32 %v415_v38 }
 0x24a   :  { %v443_v9 = vor.u32 1.1754944e-38, %v442_v32  ;;  %vm441_vm10 = vcmp.eq.f32.partialorder %v440_v48, 8.507059e+37 }
 0x24c   :  { %v945_v19 = vpop.eup %944 }
 0x24d   :  { %v417_v39 = vmul.f32 %v945_v19, %v414_v37  ;;  %vm422_vm3 = vweird.f32 %v945_v19 }
 0x24e   :  { %v947_v51 = vpop.eup %946  ;;  %vm423_vm6 = vmor %vm421_vm4, %vm422_vm3 }
 0x24f   :  { %v418_v40 = vsub.f32 1.0, %v417_v39  ;;  %v432_v41 = vmul.f32 %v947_v51, %v415_v38  ;;  %vm437_vm5 = vweird.f32 %v947_v51 }
 0x250   :  { %vm438_vm9 = vmor %vm436_vm8, %vm437_vm5 }
 0x251   :  { %v419_v44 = vmul.f32 %v945_v19, %v418_v40  ;;  %v433_v2 = vsub.f32 1.0, %v432_v41 }
 0x253   :  { %v420_v46 = vadd.f32 %v945_v19, %v419_v44  ;;  %v434_v47 = vmul.f32 %v947_v51, %v433_v2 }
 0x255   :  { %v424_v52 = vsel %vm423_vm6, %v945_v19, %v420_v46  ;;  %v435_v58 = vadd.f32 %v947_v51, %v434_v47 }
 0x256   :  { %v429_v53 = vsel %vm426_vm7, %v428_v50, %v424_v52 }
 0x257   :  { %v439_v43 = vsel %vm438_vm9, %v947_v51, %v435_v58  ;;  %v446_v54 = vmul.f32 %v939_v36, %v429_v53  ;;  %v430_v55 = vmul.f32 %v937_v35, %v429_v53 }
 0x258   :  { %v444_v56 = vsel %vm441_vm10, %v443_v9, %v439_v43 }
 0x259   :  { %v447_v57 = vmul.f32 %v943_v49, %v444_v56  ;;  %v450_v60 = vmul.f32 %v446_v54, %v1201_v8  ;;  %v445_v61 = vmul.f32 %v941_v4, %v444_v56  ;;  %v452_v3 = vmul.f32 %v430_v55, %v1211_v16 }
 0x25a   :  { %v448_v5 = vmul.f32 %v430_v55, %v1199_v6  ;;  %v454_v7 = vmul.f32 %v446_v54, %v1215_v20 }
 0x25b   :  { %v451_v11 = vmul.f32 %v447_v57, %v1208_v15  ;;  %v453_v59 = vmul.f32 %v445_v61, %v1218_v26  ;;  %v449_v0 = vmul.f32 %v445_v61, %v1204_v13  ;;  %v455_v18 = vmul.f32 %v447_v57, %v1222_v29 }
 0x25d   :  { %v463_v22 = vadd.f32 %v451_v11, %v450_v60  ;;  %v470_v1 = vadd.f32 %v453_v59, %v452_v3  ;;  %v456_v17 = vadd.f32 %v449_v0, %v448_v5  ;;  %v477_v27 = vadd.f32 %v455_v18, %v454_v7 }
 0x25f   :  { %v464_v28 = vrot.slane %v463_v22, 4  ;;  %v471_v62 = vrot.slane %v470_v1, 4  ;;  %v457_v30 = vrot.slane %v456_v17, 4  ;;  %v478_v31 = vrot.slane %v477_v27, 4 }
 0x261   :  { %v465_v33 = vadd.f32 %v464_v28, %v463_v22  ;;  %v472_v63 = vadd.f32 %v471_v62, %v470_v1  ;;  %v458_v34 = vadd.f32 %v457_v30, %v456_v17  ;;  %v479_v10 = vadd.f32 %v478_v31, %v477_v27 }
 0x263   :  { %v466_v12 = vrot.slane %v465_v33, 2  ;;  %v473_v35 = vrot.slane %v472_v63, 2  ;;  %v459_v36 = vrot.slane %v458_v34, 2  ;;  %v480_v4 = vrot.slane %v479_v10, 2 }
 0x265   :  { %v467_v37 = vadd.f32 %v466_v12, %v465_v33  ;;  %v474_v49 = vadd.f32 %v473_v35, %v472_v63  ;;  %v460_v38 = vadd.f32 %v459_v36, %v458_v34  ;;  %v481_v40 = vadd.f32 %v480_v4, %v479_v10 }
 0x267   :  { %v468_v19 = vrot.slane %v467_v37, 1  ;;  %v475_v39 = vrot.slane %v474_v49, 1  ;;  %v461_v51 = vrot.slane %v460_v38, 1  ;;  %v482_v46 = vrot.slane %v481_v40, 1 }
 0x269   :  { %v1407_v41 = vadd.f32 %v468_v19, %v467_v37  ;;  %v1409_v42 = vadd.f32 %v475_v39, %v474_v49  ;;  %v1411_v44 = vadd.f32 %v461_v51, %v460_v38  ;;  %v1419_v47 = vadd.f32 %v482_v46, %v481_v40 }
 0x26b   :  { %v485_v45 = vmul.f32 %v1407_v41, %v1407_v41  ;;  %v486_v2 = vmul.f32 %v1409_v42, %v1409_v42  ;;  %v484_v32 = vmul.f32 %v1411_v44, %v1411_v44  ;;  %v487_v48 = vmul.f32 %v1419_v47, %v1419_v47 }
 0x26d   :  { %490 = vadd.xlane.f32.xlu2 %v485_v45  ;;  %492 = vadd.xlane.f32.xlu0 %v486_v2 }
 0x26e   :  { %488 = vadd.xlane.f32.xlu1 %v484_v32 }
 0x276   :  { %494 = vadd.xlane.f32.xlu1 %v487_v48 }
 0x2e0   :  { %v1423_v50 = vpop.xlane.xlu2 %490  ;;  %v1425_v52 = vpop.xlane.xlu0 %492 }
 0x2e1   :  { %v1428_v58 = vadd.f32 1.0, %v1423_v50  ;;  %948 = vrsqrt.f32 %v1423_v50  ;;  %v1432_v53 = vadd.f32 1.0, %v1425_v52  ;;  %v1434_v9 = vpop.xlane.xlu1 %488  ;;  %vm576_vm15 = vweird.f32 %v1423_v50 }
 0x2e2   :  { %950 = vrsqrt.f32 %v1425_v52  ;;  %v1438_v43 = vadd.f32 1.0, %v1434_v9  ;;  %vm566_vm2 = vweird.f32 %v1434_v9 }
 0x2e3   :  { %952 = vrcp.f32 %v1428_v58  ;;  %v526_v54 = vand.u32 2147483648, %v1428_v58  ;;  %v524_v57 = vand.u32 2147483647, %v1428_v58  ;;  %vm520_vm11 = vweird.f32 %v1428_v58 }
 0x2e4   :  { %954 = vrcp.f32 %v1432_v53  ;;  %v511_v55 = vand.u32 2147483648, %v1438_v43  ;;  %v509_v3 = vand.u32 2147483647, %v1438_v43  ;;  %vm505_vm12 = vweird.f32 %v1438_v43 }
 0x2e5   :  { %956 = vrcp.f32 %v1438_v43  ;;  %v527_v59 = vor.u32 1.1754944e-38, %v526_v54  ;;  %v539_v0 = vand.u32 2147483647, %v1432_v53  ;;  %vm535_vm13 = vweird.f32 %v1432_v53 }
 0x2e6   :  { %958 = vrsqrt.f32 %v1434_v9  ;;  %v512_v17 = vor.u32 1.1754944e-38, %v511_v55  ;;  %vm1471_vm14 = vcmp.eq.f32.partialorder %v524_v57, 8.507059e+37  ;;  %v541_v33 = vand.u32 2147483648, %v1432_v53 }
 0x2e7   :  { %v1446_v56 = vpop.eup %948  ;;  %vm1482_vm1 = vcmp.eq.f32.partialorder %v509_v3, 8.507059e+37  ;;  %vm1488_vm3 = vcmp.eq.f32.partialorder %v539_v0, 8.507059e+37 }
 0x2e8   :  { %v1449_v60 = vpop.eup %950  ;;  %v571_v61 = vmul.f32 %v1446_v56, %v1423_v50  ;;  %vm577_vm0 = vweird.f32 %v1446_v56  ;;  %v542_v40 = vor.u32 1.1754944e-38, %v541_v33 }
 0x2e9   :  { %v953_v5 = vpop.eup %952  ;;  %v581_v7 = vmul.f32 %v1449_v60, %v1425_v52  ;;  %v1457_v11 = vpop.xlane.xlu1 %494  ;;  %vm587_vm8 = vweird.f32 %v1449_v60 }
 0x2ea   :  { %v1461_v18 = vpop.eup %954  ;;  %v572_v22 = vmul.f32 %v1446_v56, %v571_v61  ;;  %v1465_v1 = vadd.f32 1.0, %v1457_v11  ;;  %960 = vrsqrt.f32 %v1457_v11  ;;  %v516_v62 = vmul.f32 %v953_v5, %v1428_v58 }
 0x2eb   :  { %v957_v27 = vpop.eup %956  ;;  %v582_v28 = vmul.f32 %v1449_v60, %v581_v7  ;;  %v531_v31 = vmul.f32 %v1461_v18, %v1432_v53  ;;  %vm521_vm4 = vweird.f32 %v953_v5  ;;  %vm536_vm7 = vweird.f32 %v1461_v18 }
 0x2ec   :  { %v959_v63 = vpop.eup %958  ;;  %v573_v34 = vmul.f32 0.5, %v572_v22  ;;  %962 = vrcp.f32 %v1465_v1  ;;  %v501_v10 = vmul.f32 %v957_v27, %v1438_v43  ;;  %v517_v4 = vsub.f32 1.0, %v516_v62  ;;  %vm522_vm9 = vmor %vm520_vm11, %vm521_vm4 }
 0x2ed   :  { %v583_v35 = vmul.f32 0.5, %v582_v28  ;;  %v561_v36 = vmul.f32 %v959_v63, %v1434_v9  ;;  %v532_v19 = vsub.f32 1.0, %v531_v31  ;;  %vm506_vm5 = vweird.f32 %v957_v27  ;;  %vm537_vm11 = vmor %vm535_vm13, %vm536_vm7 }
 0x2ee   :  { %v574_v49 = vsub.f32 1.5, %v573_v34  ;;  %v502_v38 = vsub.f32 1.0, %v501_v10  ;;  %v518_v51 = vmul.f32 %v953_v5, %v517_v4  ;;  %vm507_vm10 = vmor %vm505_vm12, %vm506_vm5  ;;  %vm567_vm6 = vweird.f32 %v959_v63 }
 0x2ef   :  { %v562_v39 = vmul.f32 %v959_v63, %v561_v36  ;;  %v533_v32 = vmul.f32 %v1461_v18, %v532_v19  ;;  %v584_v46 = vsub.f32 1.5, %v583_v35  ;;  %v554_v58 = vand.u32 2147483647, %v1465_v1  ;;  %vm578_vm12 = vmor %vm576_vm15, %vm577_vm0 }
 0x2f0   :  { %v1492_v45 = vpop.eup %960  ;;  %v503_v2 = vmul.f32 %v957_v27, %v502_v38  ;;  %v519_v55 = vadd.f32 %v953_v5, %v518_v51  ;;  %v575_v61 = vmul.f32 %v1446_v56, %v574_v49  ;;  %vm568_vm13 = vmor %vm566_vm2, %vm567_vm6  ;;  %vm1727_vm15 = vweird.f32 %v1425_v52 }
 0x2f1   :  { %v563_v48 = vmul.f32 0.5, %v562_v39  ;;  %v591_v54 = vmul.f32 %v1492_v45, %v1457_v11  ;;  %v534_v7 = vadd.f32 %v1461_v18, %v533_v32  ;;  %v585_v10 = vmul.f32 %v1449_v60, %v584_v46  ;;  %vm588_vm0 = vmor %vm1727_vm15, %vm587_vm8 }
 0x2f2   :  { %v963_v57 = vpop.eup %962  ;;  %v504_v3 = vadd.f32 %v957_v27, %v503_v2  ;;  %v523_v28 = vsel %vm522_vm9, %v953_v5, %v519_v55  ;;  %vm597_vm4 = vweird.f32 %v1492_v45  ;;  %vm596_vm5 = vweird.f32 %v1457_v11 }
 0x2f3   :  { %v564_v0 = vsub.f32 1.5, %v563_v48  ;;  %v592_v22 = vmul.f32 %v1492_v45, %v591_v54  ;;  %v528_v62 = vsel %vm1471_vm14, %v527_v59, %v523_v28  ;;  %v538_v43 = vsel %vm537_vm11, %v1461_v18, %v534_v7  ;;  %vm598_vm6 = vmor %vm596_vm5, %vm597_vm4 }
 0x2f4   :  { %v508_v31 = vsel %vm507_vm10, %v957_v27, %v504_v3  ;;  %v546_v33 = vmul.f32 %v963_v57, %v1465_v1  ;;  %v529_v34 = vmul.f32 %v528_v62, %v1423_v50  ;;  %v579_v59 = vsel %vm578_vm12, %v1446_v56, %v575_v61 }
 0x2f5   :  { %v513_v53 = vsel %vm1482_vm1, %v512_v17, %v508_v31  ;;  %v565_v5 = vmul.f32 %v959_v63, %v564_v0  ;;  %v543_v18 = vsel %vm1488_vm3, %v542_v40, %v538_v43  ;;  %v593_v50 = vmul.f32 0.5, %v592_v22 }
 0x2f6   :  { %v514_v27 = vmul.f32 %v513_v53, %v1434_v9  ;;  %v547_v30 = vsub.f32 1.0, %v546_v33  ;;  %v601_v35 = vmul.f32 %v579_v59, %v529_v34  ;;  %v544_v17 = vmul.f32 %v543_v18, %v1425_v52 }
 0x2f7   :  { %v569_v36 = vsel %vm568_vm13, %v959_v63, %v565_v5  ;;  %vm551_vm14 = vweird.f32 %v963_v57  ;;  %v556_v56 = vand.u32 2147483648, %v1465_v1  ;;  %v589_v37 = vsel %vm588_vm0, %v1449_v60, %v585_v10 }
 0x2f8   :  { %v600_v12 = vmul.f32 %v569_v36, %v514_v27  ;;  %v548_v4 = vmul.f32 %v963_v57, %v547_v30  ;;  %v605_v49 = vmul.f32 %v601_v35, %v1407_v41  ;;  %vm550_vm1 = vweird.f32 %v1465_v1 }
 0x2f9   :  { %v594_v63 = vsub.f32 1.5, %v593_v50  ;;  %v602_v39 = vmul.f32 %v589_v37, %v544_v17  ;;  %vm552_vm2 = vmor %vm550_vm1, %vm551_vm14  ;;  %v557_v51 = vor.u32 1.1754944e-38, %v556_v56  ;;  %vm555_vm3 = vcmp.eq.f32.partialorder %v554_v58, 8.507059e+37 }
 0x2fa   :  { %v604_v9 = vmul.f32 %v600_v12, %v1411_v44  ;;  %v549_v38 = vadd.f32 %v963_v57, %v548_v4  ;;  %v610_v19 = vmul.f32 %v605_v49, %v1201_v8  ;;  %v611_v54 = vmul.f32 %v605_v49, %v1208_v15 }
 0x2fb   :  { %v606_v44 = vmul.f32 %v602_v39, %v1409_v42  ;;  %v595_v60 = vmul.f32 %v1492_v45, %v594_v63 }
 0x2fc   :  { %v609_v41 = vmul.f32 %v604_v9, %v1204_v13  ;;  %v608_v40 = vmul.f32 %v604_v9, %v1199_v6  ;;  %v553_v2 = vsel %vm552_vm2, %v963_v57, %v549_v38  ;;  %620 = vadd.xlane.f32.xlu1 %v610_v19 }
 0x2fd   :  { %v558_v52 = vsel %vm555_vm3, %v557_v51, %v553_v2  ;;  %v613_v32 = vmul.f32 %v606_v44, %v1218_v26  ;;  %v599_v46 = vsel %vm598_vm6, %v1492_v45, %v595_v60  ;;  %v612_v48 = vmul.f32 %v606_v44, %v1211_v16 }
 0x2fe   :  { %618 = vadd.xlane.f32.xlu0 %v609_v41  ;;  %616 = vadd.xlane.f32.xlu2 %v608_v40  ;;  %v559_v1 = vmul.f32 %v558_v52, %v1457_v11 }
 0x300   :  { %v603_v55 = vmul.f32 %v599_v46, %v559_v1 }
 0x302   :  { %v607_v42 = vmul.f32 %v603_v55, %v1419_v47 }
 0x304   :  { %626 = vadd.xlane.f32.xlu1 %v613_v32  ;;  %v615_v57 = vmul.f32 %v607_v42, %v1222_v29  ;;  %v614_v61 = vmul.f32 %v607_v42, %v1215_v20 }
 0x306   :  { %624 = vadd.xlane.f32.xlu0 %v612_v48  ;;  %622 = vadd.xlane.f32.xlu2 %v611_v54 }
 0x30e   :  { %630 = vadd.xlane.f32.xlu0 %v615_v57  ;;  %628 = vadd.xlane.f32.xlu2 %v614_v61 }
 0x36f   :  { %v621_v11 = vpop.xlane.xlu1 %620 }
 0x371   :  { %v619_v3 = vpop.xlane.xlu0 %618  ;;  %v617_v7 = vpop.xlane.xlu2 %616 }
 0x377   :  { %v627_v22 = vpop.xlane.xlu1 %626 }
 0x378   :  { %v633_v58 = vadd.f32 %v627_v22, %v619_v3 }
 0x379   :  { %v625_v45 = vpop.xlane.xlu0 %624  ;;  %v623_v0 = vpop.xlane.xlu2 %622 }
 0x37a   :  { %v632_v28 = vadd.f32 %v625_v45, %v617_v7  ;;  %v637_v47 = vmul.f32 %v633_v58, %v1377_v14 }
 0x37c   :  { %v636_v43 = vmul.f32 %v632_v28, %v1377_v14  ;;  %v641_v59 = vadd.f32 %v637_v47, %v1383_v21 }
 0x37e   :  { %v640_v10 = vadd.f32 %v636_v43, %v1380_v24 }
 0x381   :  { %v631_v62 = vpop.xlane.xlu0 %630  ;;  %v629_v31 = vpop.xlane.xlu2 %628 }
 0x382   :  { %v635_v33 = vadd.f32 %v631_v62, %v623_v0  ;;  %v634_v34 = vadd.f32 %v629_v31, %v621_v11 }
 0x384   :  { %v639_v53 = vmul.f32 %v635_v33, %v1377_v14  ;;  %v638_v5 = vmul.f32 %v634_v34, %v1377_v14 }
 0x386   :  { %v643_v27 = vadd.f32 %v639_v53, %v1389_v25  ;;  %v642_v18 = vadd.f32 %v638_v5, %v1386_v23 }
 0x388   :  { %v645_v30 = vmax.f32 %v641_v59, %v643_v27  ;;  %v644_v50 = vmax.f32 %v640_v10, %v642_v18 }
 0x38a   :  { %v647_v35 = vsub.f32 %v641_v59, %v645_v30  ;;  %v649_v36 = vsub.f32 %v643_v27, %v645_v30  ;;  %v646_v17 = vsub.f32 %v640_v10, %v644_v50  ;;  %v648_v12 = vsub.f32 %v642_v18, %v644_v50 }
 0x38c   :  { %v652_v4 = vmul.f32 1.442695, %v647_v35  ;;  %v656_v56 = vmul.f32 1.442695, %v649_v36  ;;  %v650_v49 = vmul.f32 1.442695, %v646_v17 }
 0x38d   :  { %v654_v9 = vmul.f32 1.442695, %v648_v12 }
 0x38e   :  { %964 = vpow2.f32 %v652_v4 }
 0x38f   :  { %966 = vpow2.f32 %v656_v56 }
 0x390   :  { %968 = vpow2.f32 %v650_v49 }
 0x391   :  { %970 = vpow2.f32 %v654_v9 }
 0x394   :  { %v965_v14 = vpop.eup %964 }
 0x395   :  { %v967_v24 = vpop.eup %966 }
 0x396   :  { %v969_v21 = vpop.eup %968  ;;  %v659_v25 = vadd.f32 %v967_v24, %v965_v14 }
 0x397   :  { %v971_v37 = vpop.eup %970 }
 0x398   :  { %972 = vrcp.f32 %v659_v25  ;;  %v658_v23 = vadd.f32 %v971_v37, %v969_v21  ;;  %v686_v41 = vand.u32 2147483648, %v659_v25  ;;  %v684_v52 = vand.u32 2147483647, %v659_v25 }
 0x399   :  { %vm680_vm8 = vweird.f32 %v659_v25 }
 0x39a   :  { %974 = vrcp.f32 %v658_v23  ;;  %v671_v44 = vand.u32 2147483648, %v658_v23  ;;  %v669_v1 = vand.u32 2147483647, %v658_v23  ;;  %v687_v46 = vor.u32 1.1754944e-38, %v686_v41 }
 0x39b   :  { %vm665_vm11 = vweird.f32 %v658_v23  ;;  %vm685_vm12 = vcmp.eq.f32.partialorder %v684_v52, 8.507059e+37 }
 0x39c   :  { %v672_v55 = vor.u32 1.1754944e-38, %v671_v44  ;;  %vm670_vm14 = vcmp.eq.f32.partialorder %v669_v1, 8.507059e+37 }
 0x39e   :  { %v973_v38 = vpop.eup %972 }
 0x39f   :  { %v676_v63 = vmul.f32 %v973_v38, %v659_v25  ;;  %vm681_vm7 = vweird.f32 %v973_v38 }
 0x3a0   :  { %v975_v19 = vpop.eup %974  ;;  %vm682_vm10 = vmor %vm680_vm8, %vm681_vm7 }
 0x3a1   :  { %v661_v39 = vmul.f32 %v975_v19, %v658_v23  ;;  %v677_v51 = vsub.f32 1.0, %v676_v63  ;;  %vm666_vm9 = vweird.f32 %v975_v19 }
 0x3a2   :  { %vm667_vm13 = vmor %vm665_vm11, %vm666_vm9 }
 0x3a3   :  { %v662_v40 = vsub.f32 1.0, %v661_v39  ;;  %v678_v2 = vmul.f32 %v973_v38, %v677_v51 }
 0x3a5   :  { %v663_v60 = vmul.f32 %v975_v19, %v662_v40  ;;  %v679_v32 = vadd.f32 %v973_v38, %v678_v2 }
 0x3a7   :  { %v664_v48 = vadd.f32 %v975_v19, %v663_v60  ;;  %v683_v54 = vsel %vm682_vm10, %v973_v38, %v679_v32 }
 0x3a8   :  { %v688_v42 = vsel %vm685_vm12, %v687_v46, %v683_v54 }
 0x3a9   :  { %v668_v57 = vsel %vm667_vm13, %v975_v19, %v664_v48  ;;  %v691_v61 = vmul.f32 %v967_v24, %v688_v42  ;;  %v689_v11 = vmul.f32 %v965_v14, %v688_v42 }
 0x3aa   :  { %v673_v3 = vsel %vm670_vm14, %v672_v55, %v668_v57 }
 0x3ab   :  { %v690_v7 = vmul.f32 %v971_v37, %v673_v3  ;;  %v695_v45 = vmul.f32 %v691_v61, %v1208_v15  ;;  %v674_v0 = vmul.f32 %v969_v21, %v673_v3  ;;  %v697_v22 = vmul.f32 %v689_v11, %v1218_v26 }
 0x3ac   :  { %v693_v28 = vmul.f32 %v689_v11, %v1204_v13  ;;  %v699_v58 = vmul.f32 %v691_v61, %v1222_v29 }
 0x3ad   :  { %v694_v62 = vmul.f32 %v690_v7, %v1201_v8  ;;  %v696_v31 = vmul.f32 %v674_v0, %v1211_v16  ;;  %v692_v43 = vmul.f32 %v674_v0, %v1199_v6  ;;  %v698_v47 = vmul.f32 %v690_v7, %v1215_v20 }
 0x3af   :  { %v707_v33 = vadd.f32 %v695_v45, %v694_v62  ;;  %v714_v34 = vadd.f32 %v697_v22, %v696_v31  ;;  %v700_v53 = vadd.f32 %v693_v28, %v692_v43  ;;  %v721_v5 = vadd.f32 %v699_v58, %v698_v47 }
 0x3b1   :  { %v708_v15 = vrot.slane %v707_v33, 4  ;;  %v715_v10 = vrot.slane %v714_v34, 4  ;;  %v701_v59 = vrot.slane %v700_v53, 4  ;;  %v722_v26 = vrot.slane %v721_v5, 4 }
 0x3b3   :  { %v709_v27 = vadd.f32 %v708_v15, %v707_v33  ;;  %v716_v13 = vadd.f32 %v715_v10, %v714_v34  ;;  %v702_v18 = vadd.f32 %v701_v59, %v700_v53  ;;  %v723_v29 = vadd.f32 %v722_v26, %v721_v5 }
 0x3b5   :  { %v710_v30 = vrot.slane %v709_v27, 2  ;;  %v717_v8 = vrot.slane %v716_v13, 2  ;;  %v703_v50 = vrot.slane %v702_v18, 2  ;;  %v724_v16 = vrot.slane %v723_v29, 2 }
 0x3b7   :  { %v711_v35 = vadd.f32 %v710_v30, %v709_v27  ;;  %v718_v6 = vadd.f32 %v717_v8, %v716_v13  ;;  %v704_v36 = vadd.f32 %v703_v50, %v702_v18  ;;  %v725_v4 = vadd.f32 %v724_v16, %v723_v29 }
 0x3b9   :  { %v712_v20 = vrot.slane %v711_v35, 1  ;;  %v719_v17 = vrot.slane %v718_v6, 1  ;;  %v705_v12 = vrot.slane %v704_v36, 1  ;;  %v726_v25 = vrot.slane %v725_v4, 1 }
 0x3bb   :  { %v1574_v56 = vadd.f32 %v712_v20, %v711_v35  ;;  %v1576_v49 = vadd.f32 %v719_v17, %v718_v6  ;;  %v1578_v9 = vadd.f32 %v705_v12, %v704_v36  ;;  %v1586_v37 = vadd.f32 %v726_v25, %v725_v4 }
 0x3bd   :  { %v729_v14 = vmul.f32 %v1574_v56, %v1574_v56  ;;  %v730_v24 = vmul.f32 %v1576_v49, %v1576_v49  ;;  %v728_v21 = vmul.f32 %v1578_v9, %v1578_v9  ;;  %v731_v23 = vmul.f32 %v1586_v37, %v1586_v37 }
 0x3bf   :  { %734 = vadd.xlane.f32.xlu2 %v729_v14  ;;  %736 = vadd.xlane.f32.xlu0 %v730_v24 }
 0x3c0   :  { %732 = vadd.xlane.f32.xlu1 %v728_v21 }
 0x3c8   :  { %738 = vadd.xlane.f32.xlu1 %v731_v23 }
 0x432   :  { %v1590_v38 = vpop.xlane.xlu2 %734  ;;  %v1592_v63 = vpop.xlane.xlu0 %736 }
 0x433   :  { %v741_v19 = vadd.f32 1.0, %v1590_v38  ;;  %976 = vrsqrt.f32 %v1590_v38  ;;  %v1597_v39 = vadd.f32 1.0, %v1592_v63  ;;  %v1599_v51 = vpop.xlane.xlu1 %732  ;;  %vm820_vm0 = vweird.f32 %v1590_v38 }
 0x434   :  { %978 = vrsqrt.f32 %v1592_v63  ;;  %v1603_v41 = vadd.f32 1.0, %v1599_v51  ;;  %vm810_vm4 = vweird.f32 %v1599_v51 }
 0x435   :  { %980 = vrcp.f32 %v741_v19  ;;  %v768_v2 = vand.u32 2147483647, %v741_v19  ;;  %v770_v52 = vand.u32 2147483648, %v741_v19  ;;  %vm764_vm15 = vweird.f32 %v741_v19 }
 0x436   :  { %982 = vrcp.f32 %v1597_v39  ;;  %v783_v32 = vand.u32 2147483647, %v1597_v39  ;;  %v785_v57 = vand.u32 2147483648, %v1597_v39  ;;  %vm779_vm2 = vweird.f32 %v1597_v39 }
 0x437   :  { %984 = vrcp.f32 %v1603_v41  ;;  %vm1627_vm1 = vcmp.eq.f32.partialorder %v768_v2, 8.507059e+37  ;;  %v771_v7 = vor.u32 1.1754944e-38, %v770_v52  ;;  %v753_v43 = vand.u32 2147483647, %v1603_v41 }
 0x438   :  { %986 = vrsqrt.f32 %v1599_v51  ;;  %v755_v10 = vand.u32 2147483648, %v1603_v41  ;;  %vm749_vm9 = vweird.f32 %v1603_v41  ;;  %v786_v50 = vor.u32 1.1754944e-38, %v785_v57 }
 0x439   :  { %v1607_v40 = vpop.eup %976  ;;  %vm754_vm12 = vcmp.eq.f32.partialorder %v753_v43, 8.507059e+37 }
 0x43a   :  { %v1610_v44 = vpop.eup %978  ;;  %v815_v60 = vmul.f32 %v1607_v40, %v1590_v38  ;;  %vm821_vm5 = vweird.f32 %v1607_v40  ;;  %v756_v17 = vor.u32 1.1754944e-38, %v755_v10 }
 0x43b   :  { %v981_v1 = vpop.eup %980  ;;  %v825_v46 = vmul.f32 %v1610_v44, %v1592_v63  ;;  %v1618_v48 = vpop.xlane.xlu1 %738  ;;  %vm1656_vm10 = vmor %vm820_vm0, %vm821_vm5  ;;  %vm830_vm5 = vweird.f32 %v1592_v63 }
 0x43c   :  { %v1620_v54 = vpop.eup %982  ;;  %v760_v55 = vmul.f32 %v981_v1, %v741_v19  ;;  %v816_v42 = vmul.f32 %v1607_v40, %v815_v60  ;;  %v1625_v61 = vadd.f32 1.0, %v1618_v48  ;;  %988 = vrsqrt.f32 %v1618_v48 }
 0x43d   :  { %v985_v11 = vpop.eup %984  ;;  %v775_v45 = vmul.f32 %v1620_v54, %v1597_v39  ;;  %v826_v0 = vmul.f32 %v1610_v44, %v825_v46  ;;  %vm765_vm3 = vweird.f32 %v981_v1  ;;  %vm780_vm8 = vweird.f32 %v1620_v54 }
 0x43e   :  { %v761_v22 = vsub.f32 1.0, %v760_v55  ;;  %v817_v28 = vmul.f32 0.5, %v816_v42  ;;  %v745_v58 = vmul.f32 %v985_v11, %v1603_v41  ;;  %v987_v62 = vpop.eup %986  ;;  %990 = vrcp.f32 %v1625_v61  ;;  %vm766_vm7 = vmor %vm764_vm15, %vm765_vm3 }
 0x43f   :  { %v776_v31 = vsub.f32 1.0, %v775_v45  ;;  %v805_v53 = vmul.f32 %v987_v62, %v1599_v51  ;;  %v827_v15 = vmul.f32 0.5, %v826_v0  ;;  %vm750_vm6 = vweird.f32 %v985_v11  ;;  %vm1668_vm13 = vmor %vm779_vm2, %vm780_vm8 }
 0x440   :  { %v762_v47 = vmul.f32 %v981_v1, %v761_v22  ;;  %v818_v33 = vsub.f32 1.5, %v817_v28  ;;  %v746_v34 = vsub.f32 1.0, %v745_v58  ;;  %vm751_vm11 = vmor %vm749_vm9, %vm750_vm6  ;;  %vm811_vm14 = vweird.f32 %v987_v62 }
 0x441   :  { %v777_v5 = vmul.f32 %v1620_v54, %v776_v31  ;;  %v806_v27 = vmul.f32 %v987_v62, %v805_v53  ;;  %v828_v20 = vsub.f32 1.5, %v827_v15  ;;  %vm784_vm15 = vcmp.eq.f32.partialorder %v783_v32, 8.507059e+37  ;;  %vm812_vm0 = vmor %vm810_vm4, %vm811_vm14 }
 0x442   :  { %v763_v59 = vadd.f32 %v981_v1, %v762_v47  ;;  %v747_v26 = vmul.f32 %v985_v11, %v746_v34  ;;  %v819_v13 = vmul.f32 %v1607_v40, %v818_v33  ;;  %v1650_v29 = vpop.eup %988  ;;  %v798_v60 = vand.u32 2147483647, %v1625_v61 }
 0x443   :  { %v778_v18 = vadd.f32 %v1620_v54, %v777_v5  ;;  %v807_v35 = vmul.f32 0.5, %v806_v27  ;;  %v835_v52 = vmul.f32 %v1650_v29, %v1618_v48  ;;  %v829_v39 = vmul.f32 %v1610_v44, %v828_v20 }
 0x444   :  { %v767_v30 = vsel %vm766_vm7, %v981_v1, %v763_v59  ;;  %v748_v16 = vadd.f32 %v985_v11, %v747_v26  ;;  %v991_v6 = vpop.eup %990  ;;  %v823_v21 = vsel %vm1656_vm10, %v1607_v40, %v819_v13  ;;  %vm831_vm2 = vweird.f32 %v1610_v44 }
 0x445   :  { %v772_v36 = vsel %vm1627_vm1, %v771_v7, %v767_v30  ;;  %v808_v24 = vsub.f32 1.5, %v807_v35  ;;  %v782_v25 = vsel %vm1668_vm13, %v1620_v54, %v778_v18  ;;  %v800_v54 = vand.u32 2147483648, %v1625_v61  ;;  %vm832_vm8 = vmor %vm830_vm5, %vm831_vm2 }
 0x446   :  { %v773_v12 = vmul.f32 %v772_v36, %v1590_v38  ;;  %v752_v14 = vsel %vm751_vm11, %v985_v11, %v748_v16  ;;  %v790_v38 = vmul.f32 %v991_v6, %v1625_v61  ;;  %v787_v1 = vsel %vm784_vm15, %v786_v50, %v782_v25 }
 0x447   :  { %v757_v23 = vsel %vm754_vm12, %v756_v17, %v752_v14  ;;  %v809_v2 = vmul.f32 %v987_v62, %v808_v24  ;;  %v836_v55 = vmul.f32 %v1650_v29, %v835_v52  ;;  %vm795_vm1 = vweird.f32 %v991_v6 }
 0x448   :  { %v845_v19 = vmul.f32 %v823_v21, %v773_v12  ;;  %v758_v41 = vmul.f32 %v757_v23, %v1599_v51  ;;  %v791_v40 = vsub.f32 1.0, %v790_v38  ;;  %vm856_vm3 = vcmask 1041409  }
 0x449   :  { %v813_v46 = vsel %vm812_vm0, %v987_v62, %v809_v2  ;;  %v837_v51 = vmul.f32 0.5, %v836_v55  ;;  %v788_v32 = vmul.f32 %v787_v1, %v1592_v63  ;;  %vm794_vm4 = vweird.f32 %v1625_v61 }
 0x44a   :  { %v849_v42 = vmul.f32 %v845_v19, %v1574_v56  ;;  %v844_v57 = vmul.f32 %v813_v46, %v758_v41  ;;  %v792_v11 = vmul.f32 %v991_v6, %v791_v40  ;;  %vm796_vm6 = vmor %vm794_vm4, %vm795_vm1  ;;  %v801_v56 = vor.u32 1.1754944e-38, %v800_v54 }
 0x44b   :  { %v838_v45 = vsub.f32 1.5, %v837_v51  ;;  %vm841_vm7 = vweird.f32 %v1650_v29  ;;  %vm799_vm9 = vcmp.eq.f32.partialorder %v798_v60, 8.507059e+37  ;;  %v833_v28 = vsel %vm832_vm8, %v1610_v44, %v829_v39 }
 0x44c   :  { %v848_v3 = vmul.f32 %v844_v57, %v1578_v9  ;;  %v793_v7 = vadd.f32 %v991_v6, %v792_v11  ;;  %vm840_vm10 = vweird.f32 %v1618_v48  ;;  %v846_v61 = vmul.f32 %v833_v28, %v788_v32 }
 0x44d   :  { %v839_v9 = vmul.f32 %v1650_v29, %v838_v45  ;;  %vm842_vm11 = vmor %vm840_vm10, %vm841_vm7 }
 0x44e   :  { %v797_v0 = vsel %vm796_vm6, %v991_v6, %v793_v7  ;;  %v857_v22 = vsel %vm856_vm3, %v849_v42, %v848_v3  ;;  %v850_v44 = vmul.f32 %v846_v61, %v1576_v49 }
 0x44f   :  { %v802_v58 = vsel %vm799_vm9, %v801_v56, %v797_v0  ;;  %861 = vst [vmem:[#allocation2] sm:$0x3] %v857_v22  ;;  %v843_v62 = vsel %vm842_vm11, %v1650_v29, %v839_v9 }
 0x450   :  { %v803_v63 = vmul.f32 %v802_v58, %v1618_v48 }
 0x452   :  { %v847_v31 = vmul.f32 %v843_v62, %v803_v63 }
 0x454   :  { %v851_v43 = vmul.f32 %v847_v31, %v1586_v37 }
 0x456   :  { %v858_v47 = vsel %vm856_vm3, %v851_v43, %v850_v44 }
 0x457   :  { %862 = vst [vmem:[#allocation2 + $0x2] sm:$0x3] %v858_v47 }
 0x458   :  { %875 = dma.vmem_to_hbm [thread:$0]  %s868_s19, 64, %s870_s17, [#allocation3], %s1018_s29, %s1018_s29, %s1022_s20  }
 0x459   :  { %1016 = dma.done.wait [#allocation3], 64  }
 0x45a   :  { %1017 = vsyncadd [#allocation3], 4294967232 }
 0x45b   :  { %880 = vsyncpa [#allocation3], 1 }

</bundles_post_ra>
